<compile_context>
chip_gen: v5e
topology: v5e:2x2
jax: 0.10.0
libtpu: 0.0.40
codegen_flags: <defaults>
</compile_context>

<pallas_src>
import functools

import jax
import jax.numpy as jnp
from jax import lax
from jax.experimental import pallas as pl
from jax.experimental.pallas import tpu as pltpu

LANE = 128   # lane (last-dim) width every activation / output is padded to
HALF = 64    # mean branch -> lanes [0:64), logvar branch -> lanes [64:128)


def _round_up(n, m):
    return ((n + m - 1) // m) * m


def _layout(input_size, num_units):
    """Static fan-in (row) layout of the packed weight slab.

    Segment order: enc0(fused), enc1(fused), enc2(fused),
                   enc3_mean, enc3_logvar, dec0, dec1, dec2, dec3.
    """
    ku = _round_up(num_units, 8)
    fan_ins = (input_size, LANE, LANE, LANE, LANE, ku, 16, 32, 64)
    offs, o = [], 0
    for k in fan_ins:
        offs.append(o)
        o += k
    return fan_ins, tuple(offs), o


# ----------------------------------------------------------------------------
# Kernel
# ----------------------------------------------------------------------------
def make_vae_kernel(input_size, num_units):
    fan_ins, offs, _ = _layout(input_size, num_units)
    (k_e0, k_e1, k_e2, k_e3m, k_e3l, k_d0, k_d1, k_d2, k_d3) = fan_ins
    (o_e0, o_e1, o_e2, o_e3m, o_e3l, o_d0, o_d1, o_d2, o_d3) = offs

    def kernel(x_ref, eps_ref, w_ref, b_ref, out_ref):
        def lin(h, off, k, bi):
            # (B,k) @ (k,128) on the MXU, f32 accumulation, explicit (default)
            # MXU precision, + lane-dense row-bias broadcast.
            return (
                jnp.dot(h, w_ref[off:off + k, :],
                        preferred_element_type=jnp.float32,
                        precision=lax.Precision.DEFAULT)
                + b_ref[bi]
            )

        x = x_ref[...]                                  # (B, input_size)

        # Fused encoder: mean branch in lanes [0:64), logvar in [64:128).
        # Zero blocks / biases keep the unused lanes exactly 0 through tanh.
        h = jnp.tanh(lin(x, o_e0, k_e0, 0))             # (B,128)
        h = jnp.tanh(lin(h, o_e1, k_e1, 1))
        h = jnp.tanh(lin(h, o_e2, k_e2, 2))
        # Last encoder layer split into two independent lane-dense matmuls.
        mean = jnp.tanh(lin(h, o_e3m, k_e3m, 3))        # (B,128), real [0:nu)
        logvar = jnp.tanh(lin(h, o_e3l, k_e3l, 4))      # (B,128), real [0:nu)

        # reparametrize: encoded = mean + eps * exp(0.5 * logvar)
        # eps is zero in padded lanes -> padded lanes of `encoded` stay 0.
        encoded = mean + eps_ref[...] * jnp.exp(0.5 * logvar)

        # Decoder (sublane-de-padded weights; slice activations to real width).
        h = jnp.tanh(lin(encoded[:, :k_d0], o_d0, k_d0, 5))
        h = jnp.tanh(lin(h[:, :k_d1], o_d1, k_d1, 6))
        h = jnp.tanh(lin(h[:, :k_d2], o_d2, k_d2, 7))
        decoded = lin(h[:, :k_d3], o_d3, k_d3, 8)       # no tanh on last layer

        out_ref[0] = decoded
        out_ref[1] = encoded
        out_ref[2] = mean
        out_ref[3] = logvar

    return kernel


# ----------------------------------------------------------------------------
# One-time (init-time) parameter packing -- NOT in the jitted forward path
# ----------------------------------------------------------------------------
def pack_vae_params(params, input_size, num_units):
    """Pack all 24 parameter tensors into one (R,128) weight slab and one
    (9,1,128) bias stack.  Call ONCE at init."""
    em, el, dc = params["enc_mean"], params["enc_logvar"], params["dec"]
    fan_ins, _, total_rows = _layout(input_size, num_units)

    def fused_w(w_m, w_l, row_l, col_l, fan_in):
        w = jnp.zeros((fan_in, LANE), jnp.float32)
        w = w.at[:w_m.shape[0], :w_m.shape[1]].set(w_m)
        w = w.at[row_l:row_l + w_l.shape[0], col_l:col_l + w_l.shape[1]].set(w_l)
        return w

    def fused_b(b_m, b_l, col_l):
        b = jnp.zeros((LANE,), jnp.float32)
        b = b.at[:b_m.shape[0]].set(b_m)
        b = b.at[col_l:col_l + b_l.shape[0]].set(b_l)
        return b

    def single_w(w, fan_in, row=0):
        out = jnp.zeros((fan_in, LANE), jnp.float32)
        return out.at[row:row + w.shape[0], :w.shape[1]].set(w)

    def single_b(b):
        return jnp.zeros((LANE,), jnp.float32).at[:b.shape[0]].set(b)

    w_segs = [
        # fused enc layer 0: x(48) -> mean lanes [0:64), logvar lanes [64:128)
        fused_w(em[0][0], el[0][0], row_l=0, col_l=HALF, fan_in=fan_ins[0]),
        # fused enc layer 1: block-diag (rows [0:64)->cols[0:32), rows [64:)->cols[64:96))
        fused_w(em[1][0], el[1][0], row_l=HALF, col_l=HALF, fan_in=LANE),
        # fused enc layer 2
        fused_w(em[2][0], el[2][0], row_l=HALF, col_l=HALF, fan_in=LANE),
        # enc layer 3, split: mean block at rows[0:16), logvar block at rows[64:80)
        single_w(em[3][0], LANE, row=0),
        single_w(el[3][0], LANE, row=HALF),
        # decoder, sublane-de-padded fan-ins (8, 16, 32, 64)
        single_w(dc[0][0], fan_ins[5]),
        single_w(dc[1][0], fan_ins[6]),
        single_w(dc[2][0], fan_ins[7]),
        single_w(dc[3][0], fan_ins[8]),
    ]
    b_segs = [
        fused_b(em[0][1], el[0][1], HALF),
        fused_b(em[1][1], el[1][1], HALF),
        fused_b(em[2][1], el[2][1], HALF),
        single_b(em[3][1]),
        single_b(el[3][1]),
        single_b(dc[0][1]),
        single_b(dc[1][1]),
        single_b(dc[2][1]),
        single_b(dc[3][1]),
    ]
    w_packed = jnp.concatenate(w_segs, axis=0)
    assert w_packed.shape == (total_rows, LANE)
    b_packed = jnp.stack(b_segs)[:, None, :]          # (9, 1, 128)
    return w_packed, b_packed


# ----------------------------------------------------------------------------
# Jitted forward wrapper
# ----------------------------------------------------------------------------
def vae_forward(x, w_packed, b_packed, eps, *, input_size, num_units):
    """x: (B, input_size) f32.  eps: (B, num_units) f32 reparametrization noise.
    w_packed/b_packed: from pack_vae_params (packed once at init)."""
    B = x.shape[0]
    fan_ins, _, _ = _layout(input_size, num_units)

    # eps is fresh data every call -> its zero-padding stays in the hot path,
    # but it is a single tiny pad (B x 128).  x is passed unpadded.
    eps_pad = jnp.pad(eps, ((0, 0), (0, LANE - num_units)))

    flops = 2 * B * sum(fan_ins) * LANE
    transcendentals = 9 * B * LANE          # 8 tanh + 1 exp on (B,128) slabs
    bytes_accessed = 4 * (x.size + eps_pad.size + w_packed.size
                          + b_packed.size + 4 * B * LANE)

    out = pl.pallas_call(
        make_vae_kernel(input_size, num_units),
        out_shape=jax.ShapeDtypeStruct((4, B, LANE), jnp.float32),
        in_specs=[pl.BlockSpec(memory_space=pltpu.VMEM)] * 4,
        out_specs=pl.BlockSpec(memory_space=pltpu.VMEM),
        cost_estimate=pl.CostEstimate(
            flops=flops,
            transcendentals=transcendentals,
            bytes_accessed=bytes_accessed,
        ),
    )(x, eps_pad, w_packed, b_packed)

    decoded = out[0, :, :input_size]
    encoded = out[1, :, :num_units]
    mean = out[2, :, :num_units]
    logvar = out[3, :, :num_units]
    return decoded, encoded, mean, logvar


# ----------------------------------------------------------------------------
# Init + pure-JAX reference
# ----------------------------------------------------------------------------
def init_params(key, num_units, input_size):
    """PyTorch nn.Linear-style init (uniform +-1/sqrt(fan_in)); W stored (in, out)."""
    enc_dims = [(input_size, 64), (64, 32), (32, 16), (16, num_units)]
    dec_dims = [(num_units, 16), (16, 32), (32, 64), (64, input_size)]

    def make(key, dims):
        out = []
        for fan_in, fan_out in dims:
            key, kw, kb = jax.random.split(key, 3)
            bound = 1.0 / jnp.sqrt(jnp.float32(fan_in))
            w = jax.random.uniform(kw, (fan_in, fan_out), jnp.float32, -bound, bound)
            b = jax.random.uniform(kb, (fan_out,), jnp.float32, -bound, bound)
            out.append((w, b))
        return key, out

    key, enc_mean = make(key, enc_dims)
    key, enc_logvar = make(key, enc_dims)
    key, dec = make(key, dec_dims)
    return {"enc_mean": enc_mean, "enc_logvar": enc_logvar, "dec": dec}


def reference_forward(x, params, eps):
    def encoder(h, ps):
        for w, b in ps:
            h = jnp.tanh(h @ w + b)
        return h

    mean = encoder(x, params["enc_mean"])
    logvar = encoder(x, params["enc_logvar"])
    encoded = mean + eps * jnp.exp(0.5 * logvar)
    h = encoded
    dec = params["dec"]
    for i, (w, b) in enumerate(dec):
        h = h @ w + b
        if i != len(dec) - 1:
            h = jnp.tanh(h)
    return h, encoded, mean, logvar


# ----------------------------------------------------------------------------
# Main
# ----------------------------------------------------------------------------
if __name__ == "__main__":
    key = jax.random.PRNGKey(0)
    batch, input_size, num_units = 8, 48, 3

    key, kx, keps = jax.random.split(key, 3)
    x = jax.random.normal(kx, (batch, input_size), jnp.float32)
    eps = jax.random.normal(keps, (batch, num_units), jnp.float32)
    params = init_params(key, num_units, input_size)

    # Pack parameters ONCE at init (outside the jitted per-forward path).
    w_packed, b_packed = pack_vae_params(params, input_size, num_units)

    fwd = jax.jit(vae_forward, static_argnames=("input_size", "num_units"))
    decoded, encoded, mean, logvar = fwd(
        x, w_packed, b_packed, eps, input_size=input_size, num_units=num_units)
    jax.block_until_ready((decoded, encoded, mean, logvar))

    d_ref, e_ref, m_ref, lv_ref = reference_forward(x, params, eps)
    assert decoded.shape == (batch, input_size)
    assert encoded.shape == (batch, num_units)
    assert mean.shape == (batch, num_units)
    assert logvar.shape == (batch, num_units)
    assert jnp.allclose(decoded, d_ref, atol=2e-5, rtol=2e-5)
    assert jnp.allclose(encoded, e_ref, atol=2e-5, rtol=2e-5)
    assert jnp.allclose(mean, m_ref, atol=2e-5, rtol=2e-5)
    assert jnp.allclose(logvar, lv_ref, atol=2e-5, rtol=2e-5)

    print("KERNEL_OK")
</pallas_src>

<mosaic_0001>
module attributes {stable_mosaic.version = 11 : i64} {
  func.func @kernel(%arg0: memref<8x48xf32, #tpu.memory_space<vmem>>, %arg1: memref<8x128xf32, #tpu.memory_space<vmem>>, %arg2: memref<680x128xf32, #tpu.memory_space<vmem>>, %arg3: memref<9x1x128xf32, #tpu.memory_space<vmem>>, %arg4: memref<4x8x128xf32, #tpu.memory_space<vmem>>) attributes {dimension_semantics = [], scalar_prefetch = 0 : i64, scratch_operands = 0 : i64, tpu.core_type = #tpu.core_type<tc>} {
    %c0 = arith.constant 0 : index
    %c0_0 = arith.constant 0 : index
    %0 = vector.load %arg0[%c0, %c0_0] : memref<8x48xf32, #tpu.memory_space<vmem>>, vector<8x48xf32>
    %c0_1 = arith.constant 0 : index
    %c0_2 = arith.constant 0 : index
    %1 = vector.load %arg2[%c0_1, %c0_2] : memref<680x128xf32, #tpu.memory_space<vmem>>, vector<48x128xf32>
    %cst = arith.constant dense<0.000000e+00> : vector<8x128xf32>
    %2 = tpu.matmul %0, %1, %cst {dimension_numbers = #tpu.dot_dimension_numbers<[1], [0], [0], [1], [0, 0, 1, 1], [], []>} : vector<8x48xf32>, vector<48x128xf32>, vector<8x128xf32> -> vector<8x128xf32>
    %c0_3 = arith.constant 0 : index
    %c0_4 = arith.constant 0 : index
    %c0_5 = arith.constant 0 : index
    %3 = vector.load %arg3[%c0_3, %c0_4, %c0_5] : memref<9x1x128xf32, #tpu.memory_space<vmem>>, vector<1x1x128xf32>
    %4 = vector.shape_cast %3 : vector<1x1x128xf32> to vector<1x128xf32>
    %5 = vector.broadcast %4 : vector<1x128xf32> to vector<8x128xf32>
    %6 = arith.addf %2, %5 : vector<8x128xf32>
    %7 = math.tanh %6 : vector<8x128xf32>
    %c48 = arith.constant 48 : index
    %c0_6 = arith.constant 0 : index
    %8 = vector.load %arg2[%c48, %c0_6] : memref<680x128xf32, #tpu.memory_space<vmem>>, vector<128x128xf32>
    %cst_7 = arith.constant dense<0.000000e+00> : vector<8x128xf32>
    %9 = tpu.matmul %7, %8, %cst_7 {dimension_numbers = #tpu.dot_dimension_numbers<[1], [0], [0], [1], [0, 0, 1, 1], [], []>} : vector<8x128xf32>, vector<128x128xf32>, vector<8x128xf32> -> vector<8x128xf32>
    %c1 = arith.constant 1 : index
    %c0_8 = arith.constant 0 : index
    %c0_9 = arith.constant 0 : index
    %10 = vector.load %arg3[%c1, %c0_8, %c0_9] : memref<9x1x128xf32, #tpu.memory_space<vmem>>, vector<1x1x128xf32>
    %11 = vector.shape_cast %10 : vector<1x1x128xf32> to vector<1x128xf32>
    %12 = vector.broadcast %11 : vector<1x128xf32> to vector<8x128xf32>
    %13 = arith.addf %9, %12 : vector<8x128xf32>
    %14 = math.tanh %13 : vector<8x128xf32>
    %c176 = arith.constant 176 : index
    %c0_10 = arith.constant 0 : index
    %15 = vector.load %arg2[%c176, %c0_10] : memref<680x128xf32, #tpu.memory_space<vmem>>, vector<128x128xf32>
    %cst_11 = arith.constant dense<0.000000e+00> : vector<8x128xf32>
    %16 = tpu.matmul %14, %15, %cst_11 {dimension_numbers = #tpu.dot_dimension_numbers<[1], [0], [0], [1], [0, 0, 1, 1], [], []>} : vector<8x128xf32>, vector<128x128xf32>, vector<8x128xf32> -> vector<8x128xf32>
    %c2 = arith.constant 2 : index
    %c0_12 = arith.constant 0 : index
    %c0_13 = arith.constant 0 : index
    %17 = vector.load %arg3[%c2, %c0_12, %c0_13] : memref<9x1x128xf32, #tpu.memory_space<vmem>>, vector<1x1x128xf32>
    %18 = vector.shape_cast %17 : vector<1x1x128xf32> to vector<1x128xf32>
    %19 = vector.broadcast %18 : vector<1x128xf32> to vector<8x128xf32>
    %20 = arith.addf %16, %19 : vector<8x128xf32>
    %21 = math.tanh %20 : vector<8x128xf32>
    %c304 = arith.constant 304 : index
    %c0_14 = arith.constant 0 : index
    %22 = vector.load %arg2[%c304, %c0_14] : memref<680x128xf32, #tpu.memory_space<vmem>>, vector<128x128xf32>
    %cst_15 = arith.constant dense<0.000000e+00> : vector<8x128xf32>
    %23 = tpu.matmul %21, %22, %cst_15 {dimension_numbers = #tpu.dot_dimension_numbers<[1], [0], [0], [1], [0, 0, 1, 1], [], []>} : vector<8x128xf32>, vector<128x128xf32>, vector<8x128xf32> -> vector<8x128xf32>
    %c3 = arith.constant 3 : index
    %c0_16 = arith.constant 0 : index
    %c0_17 = arith.constant 0 : index
    %24 = vector.load %arg3[%c3, %c0_16, %c0_17] : memref<9x1x128xf32, #tpu.memory_space<vmem>>, vector<1x1x128xf32>
    %25 = vector.shape_cast %24 : vector<1x1x128xf32> to vector<1x128xf32>
    %26 = vector.broadcast %25 : vector<1x128xf32> to vector<8x128xf32>
    %27 = arith.addf %23, %26 : vector<8x128xf32>
    %28 = math.tanh %27 : vector<8x128xf32>
    %c432 = arith.constant 432 : index
    %c0_18 = arith.constant 0 : index
    %29 = vector.load %arg2[%c432, %c0_18] : memref<680x128xf32, #tpu.memory_space<vmem>>, vector<128x128xf32>
    %cst_19 = arith.constant dense<0.000000e+00> : vector<8x128xf32>
    %30 = tpu.matmul %21, %29, %cst_19 {dimension_numbers = #tpu.dot_dimension_numbers<[1], [0], [0], [1], [0, 0, 1, 1], [], []>} : vector<8x128xf32>, vector<128x128xf32>, vector<8x128xf32> -> vector<8x128xf32>
    %c4 = arith.constant 4 : index
    %c0_20 = arith.constant 0 : index
    %c0_21 = arith.constant 0 : index
    %31 = vector.load %arg3[%c4, %c0_20, %c0_21] : memref<9x1x128xf32, #tpu.memory_space<vmem>>, vector<1x1x128xf32>
    %32 = vector.shape_cast %31 : vector<1x1x128xf32> to vector<1x128xf32>
    %33 = vector.broadcast %32 : vector<1x128xf32> to vector<8x128xf32>
    %34 = arith.addf %30, %33 : vector<8x128xf32>
    %35 = math.tanh %34 : vector<8x128xf32>
    %c0_22 = arith.constant 0 : index
    %c0_23 = arith.constant 0 : index
    %36 = vector.load %arg1[%c0_22, %c0_23] : memref<8x128xf32, #tpu.memory_space<vmem>>, vector<8x128xf32>
    %cst_24 = arith.constant 5.000000e-01 : f32
    %37 = vector.broadcast %cst_24 : f32 to vector<8x128xf32>
    %38 = arith.mulf %37, %35 : vector<8x128xf32>
    %39 = math.exp %38 : vector<8x128xf32>
    %40 = arith.mulf %36, %39 : vector<8x128xf32>
    %41 = arith.addf %28, %40 : vector<8x128xf32>
    %42 = vector.extract_strided_slice %41 {offsets = [0, 0], sizes = [8, 8], strides = [1, 1]} : vector<8x128xf32> to vector<8x8xf32>
    %c560 = arith.constant 560 : index
    %c0_25 = arith.constant 0 : index
    %43 = vector.load %arg2[%c560, %c0_25] : memref<680x128xf32, #tpu.memory_space<vmem>>, vector<8x128xf32>
    %cst_26 = arith.constant dense<0.000000e+00> : vector<8x128xf32>
    %44 = tpu.matmul %42, %43, %cst_26 {dimension_numbers = #tpu.dot_dimension_numbers<[1], [0], [0], [1], [0, 0, 1, 1], [], []>} : vector<8x8xf32>, vector<8x128xf32>, vector<8x128xf32> -> vector<8x128xf32>
    %c5 = arith.constant 5 : index
    %c0_27 = arith.constant 0 : index
    %c0_28 = arith.constant 0 : index
    %45 = vector.load %arg3[%c5, %c0_27, %c0_28] : memref<9x1x128xf32, #tpu.memory_space<vmem>>, vector<1x1x128xf32>
    %46 = vector.shape_cast %45 : vector<1x1x128xf32> to vector<1x128xf32>
    %47 = vector.broadcast %46 : vector<1x128xf32> to vector<8x128xf32>
    %48 = arith.addf %44, %47 : vector<8x128xf32>
    %49 = math.tanh %48 : vector<8x128xf32>
    %50 = vector.extract_strided_slice %49 {offsets = [0, 0], sizes = [8, 16], strides = [1, 1]} : vector<8x128xf32> to vector<8x16xf32>
    %c568 = arith.constant 568 : index
    %c0_29 = arith.constant 0 : index
    %51 = vector.load %arg2[%c568, %c0_29] : memref<680x128xf32, #tpu.memory_space<vmem>>, vector<16x128xf32>
    %cst_30 = arith.constant dense<0.000000e+00> : vector<8x128xf32>
    %52 = tpu.matmul %50, %51, %cst_30 {dimension_numbers = #tpu.dot_dimension_numbers<[1], [0], [0], [1], [0, 0, 1, 1], [], []>} : vector<8x16xf32>, vector<16x128xf32>, vector<8x128xf32> -> vector<8x128xf32>
    %c6 = arith.constant 6 : index
    %c0_31 = arith.constant 0 : index
    %c0_32 = arith.constant 0 : index
    %53 = vector.load %arg3[%c6, %c0_31, %c0_32] : memref<9x1x128xf32, #tpu.memory_space<vmem>>, vector<1x1x128xf32>
    %54 = vector.shape_cast %53 : vector<1x1x128xf32> to vector<1x128xf32>
    %55 = vector.broadcast %54 : vector<1x128xf32> to vector<8x128xf32>
    %56 = arith.addf %52, %55 : vector<8x128xf32>
    %57 = math.tanh %56 : vector<8x128xf32>
    %58 = vector.extract_strided_slice %57 {offsets = [0, 0], sizes = [8, 32], strides = [1, 1]} : vector<8x128xf32> to vector<8x32xf32>
    %c584 = arith.constant 584 : index
    %c0_33 = arith.constant 0 : index
    %59 = vector.load %arg2[%c584, %c0_33] : memref<680x128xf32, #tpu.memory_space<vmem>>, vector<32x128xf32>
    %cst_34 = arith.constant dense<0.000000e+00> : vector<8x128xf32>
    %60 = tpu.matmul %58, %59, %cst_34 {dimension_numbers = #tpu.dot_dimension_numbers<[1], [0], [0], [1], [0, 0, 1, 1], [], []>} : vector<8x32xf32>, vector<32x128xf32>, vector<8x128xf32> -> vector<8x128xf32>
    %c7 = arith.constant 7 : index
    %c0_35 = arith.constant 0 : index
    %c0_36 = arith.constant 0 : index
    %61 = vector.load %arg3[%c7, %c0_35, %c0_36] : memref<9x1x128xf32, #tpu.memory_space<vmem>>, vector<1x1x128xf32>
    %62 = vector.shape_cast %61 : vector<1x1x128xf32> to vector<1x128xf32>
    %63 = vector.broadcast %62 : vector<1x128xf32> to vector<8x128xf32>
    %64 = arith.addf %60, %63 : vector<8x128xf32>
    %65 = math.tanh %64 : vector<8x128xf32>
    %66 = vector.extract_strided_slice %65 {offsets = [0, 0], sizes = [8, 64], strides = [1, 1]} : vector<8x128xf32> to vector<8x64xf32>
    %c616 = arith.constant 616 : index
    %c0_37 = arith.constant 0 : index
    %67 = vector.load %arg2[%c616, %c0_37] : memref<680x128xf32, #tpu.memory_space<vmem>>, vector<64x128xf32>
    %cst_38 = arith.constant dense<0.000000e+00> : vector<8x128xf32>
    %68 = tpu.matmul %66, %67, %cst_38 {dimension_numbers = #tpu.dot_dimension_numbers<[1], [0], [0], [1], [0, 0, 1, 1], [], []>} : vector<8x64xf32>, vector<64x128xf32>, vector<8x128xf32> -> vector<8x128xf32>
    %c8 = arith.constant 8 : index
    %c0_39 = arith.constant 0 : index
    %c0_40 = arith.constant 0 : index
    %69 = vector.load %arg3[%c8, %c0_39, %c0_40] : memref<9x1x128xf32, #tpu.memory_space<vmem>>, vector<1x1x128xf32>
    %70 = vector.shape_cast %69 : vector<1x1x128xf32> to vector<1x128xf32>
    %71 = vector.broadcast %70 : vector<1x128xf32> to vector<8x128xf32>
    %72 = arith.addf %68, %71 : vector<8x128xf32>
    %c0_41 = arith.constant 0 : index
    %c0_42 = arith.constant 0 : index
    %c0_43 = arith.constant 0 : index
    %73 = vector.load %arg4[%c0_41, %c0_42, %c0_43] : memref<4x8x128xf32, #tpu.memory_space<vmem>>, vector<1x8x128xf32>
    %74 = vector.shape_cast %73 : vector<1x8x128xf32> to vector<8x128xf32>
    %75 = vector.shape_cast %72 : vector<8x128xf32> to vector<1x8x128xf32>
    tpu.vector_store %arg4[%c0_41, %c0_42, %c0_43], %75 {strides = array<i32>} : memref<4x8x128xf32, #tpu.memory_space<vmem>>, vector<1x8x128xf32>,
    %c1_44 = arith.constant 1 : index
    %c0_45 = arith.constant 0 : index
    %c0_46 = arith.constant 0 : index
    %76 = vector.load %arg4[%c1_44, %c0_45, %c0_46] : memref<4x8x128xf32, #tpu.memory_space<vmem>>, vector<1x8x128xf32>
    %77 = vector.shape_cast %76 : vector<1x8x128xf32> to vector<8x128xf32>
    %78 = vector.shape_cast %41 : vector<8x128xf32> to vector<1x8x128xf32>
    tpu.vector_store %arg4[%c1_44, %c0_45, %c0_46], %78 {strides = array<i32>} : memref<4x8x128xf32, #tpu.memory_space<vmem>>, vector<1x8x128xf32>,
    %c2_47 = arith.constant 2 : index
    %c0_48 = arith.constant 0 : index
    %c0_49 = arith.constant 0 : index
    %79 = vector.load %arg4[%c2_47, %c0_48, %c0_49] : memref<4x8x128xf32, #tpu.memory_space<vmem>>, vector<1x8x128xf32>
    %80 = vector.shape_cast %79 : vector<1x8x128xf32> to vector<8x128xf32>
    %81 = vector.shape_cast %28 : vector<8x128xf32> to vector<1x8x128xf32>
    tpu.vector_store %arg4[%c2_47, %c0_48, %c0_49], %81 {strides = array<i32>} : memref<4x8x128xf32, #tpu.memory_space<vmem>>, vector<1x8x128xf32>,
    %c3_50 = arith.constant 3 : index
    %c0_51 = arith.constant 0 : index
    %c0_52 = arith.constant 0 : index
    %82 = vector.load %arg4[%c3_50, %c0_51, %c0_52] : memref<4x8x128xf32, #tpu.memory_space<vmem>>, vector<1x8x128xf32>
    %83 = vector.shape_cast %82 : vector<1x8x128xf32> to vector<8x128xf32>
    %84 = vector.shape_cast %35 : vector<8x128xf32> to vector<1x8x128xf32>
    tpu.vector_store %arg4[%c3_50, %c0_51, %c0_52], %84 {strides = array<i32>} : memref<4x8x128xf32, #tpu.memory_space<vmem>>, vector<1x8x128xf32>,
    return
  }
}

</mosaic_0001>

<bundles_post_ra>
// kernel: vae_forward.1
= control target key start
LH: loop header
LB: loop body
LE: loop exit
PB: predicated region body
PF: predicated region fallthrough
CT: control target
= control target key end

     0   :  { %9 = vsyncpa [#allocation3], 0  ;;  %s461_s18 = smov [#allocation2]   ;;  %s462_s20 = smov 128   ;;  %s537_s0 = inlined_call_operand.vmem [shape: f32[8,48], index: 0, kind: input, shape index: {}]   ;;  %s538_s1 = inlined_call_operand.vmem [shape: f32[8,128], index: 1, kind: input, shape index: {}]   ;;  %s539_s2 = inlined_call_operand.hbm [shape: f32[680,128], index: 2, kind: input, shape index: {}]   ;;  %s540_s3 = inlined_call_operand.vmem [shape: f32[9,1,128], index: 3, kind: input, shape index: {}]   ;;  %s541_s4 = inlined_call_operand.vmem [shape: f32[4,8,128], index: 4, kind: output, shape index: {}]  }
   0x1   :  { %s18_s17 = sshll.u32 %s539_s2, 4  ;;  %s20_s19 = sshll.u32 %s461_s18, 4  ;;  %s19_s17 = int_to_ptr.hbm [resolvable:$true] %s18_s17  ;;  %s21_s19 = int_to_ptr.vmem [resolvable:$true] %s20_s19 }
   0x2   :  { %s463_s21 = smov 8  }
   0x3   :  { %26 = dma.hbm_to_vmem [thread:$0]  %s19_s17, 10880, %s21_s19, [#allocation3], %s462_s20, %s462_s20, %s463_s21  }
   0x4   :  { %459 = dma.done.wait [#allocation3], 10880  }
   0x5   :  { %460 = vsyncadd [#allocation3], 4294956416  ;;  %v39_v0 = vld [vmem:[#allocation2 + $0x28] sm:$0xff]  ;;  %v38_v1 = vld [vmem:[#allocation2 + $0x20] sm:$0xff]  ;;  %vm44_vm0 = vcmask 392192   ;;  %vm249_vm1 = vcmask 64512  }
   0x6   :  { %58 = vmatpush.msra.mxu0 %v39_v0  ;;  %v37_v2 = vld [vmem:[#allocation2 + $0x18] sm:$0xff]  ;;  %v84_v3 = vld [vmem:[#allocation2 + $0xa8] sm:$0xff]  ;;  %v83_v4 = vld [vmem:[#allocation2 + $0xa0] sm:$0xff]  ;;  %vm281_vm2 = vcmask 130048   ;;  %vm315_vm3 = vcmask 261120   ;;  %vm353_vm4 = vcmask 523264  }
   0x7   :  { %90 = vmatpush.msra.mxu1 %v84_v3  ;;  %v36_v5 = vld [vmem:[#allocation2 + $0x10] sm:$0xff]  ;;  %v82_v6 = vld [vmem:[#allocation2 + $0x98] sm:$0xff]  ;;  %v35_v7 = vld [vmem:[#allocation2 + $0x8] sm:$0xff] }
   0x8   :  { %59 = vmatpush.msra.mxu0 %v38_v1  ;;  %v81_v8 = vld [vmem:[#allocation2 + $0x90] sm:$0xff]  ;;  %v34_v9 = vld [vmem:[#allocation2] sm:$0xff]  ;;  %v80_v10 = vld [vmem:[#allocation2 + $0x88] sm:$0xff] }
   0x9   :  { %91 = vmatpush.msra.mxu1 %v83_v4  ;;  %v33_v11 = vld [vmem:[%s537_s0] sm:$0xff]  ;;  %v78_v13 = vld [vmem:[#allocation2 + $0x78] sm:$0xff]  ;;  %v77_v14 = vld [vmem:[#allocation2 + $0x70] sm:$0xff] }
   0xa   :  { %60 = vmatpush.msra.mxu0 %v37_v2  ;;  %v79_v12 = vld [vmem:[#allocation2 + $0x80] sm:$0xff]  ;;  %v76_v15 = vld [vmem:[#allocation2 + $0x68] sm:$0xff]  ;;  %v74_v17 = vld [vmem:[#allocation2 + $0x58] sm:$0xff] }
   0xb   :  { %92 = vmatpush.msra.mxu1 %v82_v6  ;;  %v75_v16 = vld [vmem:[#allocation2 + $0x60] sm:$0xff]  ;;  %v73_v18 = vld [vmem:[#allocation2 + $0x50] sm:$0xff]  ;;  %v72_v19 = vld [vmem:[#allocation2 + $0x48] sm:$0xff] }
   0xc   :  { %61 = vmatpush.msra.mxu0 %v36_v5  ;;  %v71_v20 = vld [vmem:[#allocation2 + $0x40] sm:$0xff]  ;;  %v70_v21 = vld [vmem:[#allocation2 + $0x38] sm:$0xff]  ;;  %v69_v22 = vld [vmem:[#allocation2 + $0x30] sm:$0xff] }
   0xd   :  { %93 = vmatpush.msra.mxu1 %v81_v8  ;;  %v126_v23 = vld [vmem:[#allocation2 + $0x128] sm:$0xff]  ;;  %v125_v24 = vld [vmem:[#allocation2 + $0x120] sm:$0xff]  ;;  %v124_v25 = vld [vmem:[#allocation2 + $0x118] sm:$0xff] }
   0xe   :  { %62 = vmatpush.msra.mxu0 %v35_v7  ;;  %132 = vmatpush.msra.mxu2 %v126_v23  ;;  %v123_v26 = vld [vmem:[#allocation2 + $0x110] sm:$0xff]  ;;  %v122_v27 = vld [vmem:[#allocation2 + $0x108] sm:$0xff]  ;;  %v121_v28 = vld [vmem:[#allocation2 + $0x100] sm:$0xff] }
   0xf   :  { %94 = vmatpush.msra.mxu1 %v80_v10  ;;  %v120_v29 = vld [vmem:[#allocation2 + $0xf8] sm:$0xff]  ;;  %v119_v30 = vld [vmem:[#allocation2 + $0xf0] sm:$0xff]  ;;  %v118_v31 = vld [vmem:[#allocation2 + $0xe8] sm:$0xff] }
  0x10   :  { %63 = vmatpush.msra.mxu0 %v34_v9  ;;  %133 = vmatpush.msra.mxu2 %v125_v24  ;;  %v117_v32 = vld [vmem:[#allocation2 + $0xe0] sm:$0xff]  ;;  %v116_v33 = vld [vmem:[#allocation2 + $0xd8] sm:$0xff]  ;;  %v115_v38 = vld [vmem:[#allocation2 + $0xd0] sm:$0xff] }
  0x11   :  { %389 = vmatmul.msk.f32.vlgmr.msra.gmra.mxu0 %vm44_vm0, %v33_v11  ;;  %95 = vmatpush.msra.mxu1 %v79_v12  ;;  %v408_v34 = vld [vmem:[%s540_s3] ss:$0 sm:$0xff]  ;;  %v114_v39 = vld [vmem:[#allocation2 + $0xc8] sm:$0xff]  ;;  %v112_v41 = vld [vmem:[#allocation2 + $0xb8] sm:$0xff] }
  0x12   :  { %134 = vmatpush.msra.mxu2 %v124_v25  ;;  %v113_v40 = vld [vmem:[#allocation2 + $0xc0] sm:$0xff]  ;;  %v111_v42 = vld [vmem:[#allocation2 + $0xb0] sm:$0xff]  ;;  %v168_v43 = vld [vmem:[#allocation2 + $0x1a8] sm:$0xff] }
  0x13   :  { %96 = vmatpush.msra.mxu1 %v78_v13  ;;  %v210_v44 = vld [vmem:[#allocation2 + $0x228] sm:$0xff]  ;;  %v167_v45 = vld [vmem:[#allocation2 + $0x1a0] sm:$0xff]  ;;  %174 = vmatpush.msra.mxu3 %v168_v43  ;;  %v166_v47 = vld [vmem:[#allocation2 + $0x198] sm:$0xff] }
  0x14   :  { %135 = vmatpush.msra.mxu2 %v123_v26  ;;  %216 = vmatpush.msrb.mxu0 %v210_v44  ;;  %v209_v46 = vld [vmem:[#allocation2 + $0x220] sm:$0xff]  ;;  %v208_v48 = vld [vmem:[#allocation2 + $0x218] sm:$0xff]  ;;  %v165_v49 = vld [vmem:[#allocation2 + $0x190] sm:$0xff] }
  0x15   :  { %97 = vmatpush.msra.mxu1 %v77_v14  ;;  %175 = vmatpush.msra.mxu3 %v167_v45  ;;  %v207_v50 = vld [vmem:[#allocation2 + $0x210] sm:$0xff]  ;;  %v164_v51 = vld [vmem:[#allocation2 + $0x188] sm:$0xff]  ;;  %v163_v53 = vld [vmem:[#allocation2 + $0x180] sm:$0xff] }
  0x16   :  { %136 = vmatpush.msra.mxu2 %v122_v27  ;;  %217 = vmatpush.msrb.mxu0 %v209_v46  ;;  %v206_v52 = vld [vmem:[#allocation2 + $0x208] sm:$0xff]  ;;  %v205_v54 = vld [vmem:[#allocation2 + $0x200] sm:$0xff]  ;;  %v162_v55 = vld [vmem:[#allocation2 + $0x178] sm:$0xff] }
  0x17   :  { %98 = vmatpush.msra.mxu1 %v76_v15  ;;  %176 = vmatpush.msra.mxu3 %v166_v47  ;;  %v204_v56 = vld [vmem:[#allocation2 + $0x1f8] sm:$0xff]  ;;  %v161_v57 = vld [vmem:[#allocation2 + $0x170] sm:$0xff]  ;;  %v160_v59 = vld [vmem:[#allocation2 + $0x168] sm:$0xff] }
  0x18   :  { %137 = vmatpush.msra.mxu2 %v121_v28  ;;  %218 = vmatpush.msrb.mxu0 %v208_v48  ;;  %v203_v58 = vld [vmem:[#allocation2 + $0x1f0] sm:$0xff]  ;;  %v202_v60 = vld [vmem:[#allocation2 + $0x1e8] sm:$0xff]  ;;  %v159_v61 = vld [vmem:[#allocation2 + $0x160] sm:$0xff] }
  0x19   :  { %99 = vmatpush.msra.mxu1 %v75_v16  ;;  %177 = vmatpush.msra.mxu3 %v165_v49  ;;  %v201_v62 = vld [vmem:[#allocation2 + $0x1e0] sm:$0xff]  ;;  %v158_v63 = vld [vmem:[#allocation2 + $0x158] sm:$0xff]  ;;  %v157_v5 = vld [vmem:[#allocation2 + $0x150] sm:$0xff] }
  0x1a   :  { %138 = vmatpush.msra.mxu2 %v120_v29  ;;  %219 = vmatpush.msrb.mxu0 %v207_v50  ;;  %v200_v0 = vld [vmem:[#allocation2 + $0x1d8] sm:$0xff]  ;;  %v409_v1 = vld [vmem:[%s540_s3 + $0x1] ss:$0 sm:$0xff]  ;;  %v199_v6 = vld [vmem:[#allocation2 + $0x1d0] sm:$0xff] }
  0x1b   :  { %100 = vmatpush.msra.mxu1 %v74_v17  ;;  %178 = vmatpush.msra.mxu3 %v164_v51  ;;  %v156_v7 = vld [vmem:[#allocation2 + $0x148] sm:$0xff]  ;;  %v155_v9 = vld [vmem:[#allocation2 + $0x140] sm:$0xff]  ;;  %v154_v11 = vld [vmem:[#allocation2 + $0x138] sm:$0xff] }
  0x1c   :  { %139 = vmatpush.msra.mxu2 %v119_v30  ;;  %220 = vmatpush.msrb.mxu0 %v206_v52  ;;  %v198_v8 = vld [vmem:[#allocation2 + $0x1c8] sm:$0xff]  ;;  %v197_v10 = vld [vmem:[#allocation2 + $0x1c0] sm:$0xff]  ;;  %v196_v12 = vld [vmem:[#allocation2 + $0x1b8] sm:$0xff] }
  0x1d   :  { %101 = vmatpush.msra.mxu1 %v73_v18  ;;  %179 = vmatpush.msra.mxu3 %v163_v53  ;;  %v153_v13 = vld [vmem:[#allocation2 + $0x130] sm:$0xff]  ;;  %v410_v15 = vld [vmem:[%s540_s3 + $0x2] ss:$0 sm:$0xff]  ;;  %v412_v23 = vld [vmem:[%s540_s3 + $0x3] ss:$0 sm:$0xff] }
  0x1e   :  { %140 = vmatpush.msra.mxu2 %v118_v31  ;;  %221 = vmatpush.msrb.mxu0 %v205_v54  ;;  %v195_v14 = vld [vmem:[#allocation2 + $0x1b0] sm:$0xff]  ;;  %v237_v30 = vld [vmem:[%s538_s1] sm:$0xff]  ;;  %v306_v43 = vld [vmem:[#allocation2 + $0x248] sm:$0xff] }
  0x1f   :  { %102 = vmatpush.msra.mxu1 %v72_v19  ;;  %180 = vmatpush.msra.mxu3 %v162_v55  ;;  %v243_v19 = vld [vmem:[#allocation2 + $0x230] sm:$0xff]  ;;  %v347_v44 = vld [vmem:[#allocation2 + $0x2a0] sm:$0xff]  ;;  %v346_v45 = vld [vmem:[#allocation2 + $0x298] sm:$0xff] }
  0x20   :  { %141 = vmatpush.msra.mxu2 %v117_v32  ;;  %222 = vmatpush.msrb.mxu0 %v204_v56  ;;  %v345_v46 = vld [vmem:[#allocation2 + $0x290] sm:$0xff]  ;;  %v414_v47 = vld [vmem:[%s540_s3 + $0x6] ss:$0 sm:$0xff]  ;;  %v344_v51 = vld [vmem:[#allocation2 + $0x288] sm:$0xff] }
  0x21   :  { %103 = vmatpush.msra.mxu1 %v71_v20  ;;  %181 = vmatpush.msra.mxu3 %v161_v57  ;;  %v411_v20 = vld [vmem:[%s540_s3 + $0x4] ss:$0 sm:$0xff]  ;;  %v342_v53 = vld [vmem:[#allocation2 + $0x278] sm:$0xff]  ;;  %v341_v54 = vld [vmem:[#allocation2 + $0x270] sm:$0xff] }
  0x22   :  { %142 = vmatpush.msra.mxu2 %v116_v33  ;;  %223 = vmatpush.msrb.mxu0 %v203_v58  ;;  %v343_v52 = vld [vmem:[#allocation2 + $0x280] sm:$0xff]  ;;  %v340_v55 = vld [vmem:[#allocation2 + $0x268] sm:$0xff] }
  0x23   :  { %104 = vmatpush.msra.mxu1 %v70_v21  ;;  %182 = vmatpush.msra.mxu3 %v160_v59  ;;  %v415_v56 = vld [vmem:[%s540_s3 + $0x7] ss:$0 sm:$0xff] }
  0x24   :  { %143 = vmatpush.msra.mxu2 %v115_v38  ;;  %224 = vmatpush.msrb.mxu0 %v202_v60  ;;  %v416_v60 = vld [vmem:[%s540_s3 + $0x8] ss:$0 sm:$0xff] }
  0x25   :  { %105 = vmatpush.msra.mxu1 %v69_v22  ;;  %183 = vmatpush.msra.mxu3 %v159_v61 }
  0x26   :  { %144 = vmatpush.msra.mxu2 %v114_v39  ;;  %225 = vmatpush.msrb.mxu0 %v201_v62 }
  0x27   :  { %184 = vmatpush.msra.mxu3 %v158_v63  ;;  %365 = vmatpush.msrb.mxu1 %v347_v44 }
  0x28   :  { %145 = vmatpush.msra.mxu2 %v113_v40  ;;  %226 = vmatpush.msrb.mxu0 %v200_v0  ;;  %v309_v40 = vld [vmem:[#allocation2 + $0x260] sm:$0xff] }
  0x29   :  { %185 = vmatpush.msra.mxu3 %v157_v5  ;;  %366 = vmatpush.msrb.mxu1 %v346_v45 }
  0x2a   :  { %146 = vmatpush.msra.mxu2 %v112_v41  ;;  %227 = vmatpush.msrb.mxu0 %v199_v6  ;;  %v308_v41 = vld [vmem:[#allocation2 + $0x258] sm:$0xff] }
  0x2b   :  { %186 = vmatpush.msra.mxu3 %v156_v7  ;;  %367 = vmatpush.msrb.mxu1 %v345_v46 }
  0x2c   :  { %147 = vmatpush.msra.mxu2 %v111_v42  ;;  %228 = vmatpush.msrb.mxu0 %v198_v8  ;;  %v307_v42 = vld [vmem:[#allocation2 + $0x250] sm:$0xff] }
  0x2d   :  { %187 = vmatpush.msra.mxu3 %v155_v9  ;;  %368 = vmatpush.msrb.mxu1 %v344_v51 }
  0x2e   :  { %229 = vmatpush.msrb.mxu0 %v197_v10  ;;  %268 = vmatpush.msrb.mxu2 %v243_v19 }
  0x2f   :  { %188 = vmatpush.msra.mxu3 %v154_v11  ;;  %369 = vmatpush.msrb.mxu1 %v343_v52 }
  0x30   :  { %230 = vmatpush.msrb.mxu0 %v196_v12 }
  0x31   :  { %189 = vmatpush.msra.mxu3 %v153_v13  ;;  %370 = vmatpush.msrb.mxu1 %v342_v53 }
  0x32   :  { %231 = vmatpush.msrb.mxu0 %v195_v14 }
  0x33   :  { %331 = vmatpush.msrb.mxu3 %v309_v40  ;;  %371 = vmatpush.msrb.mxu1 %v341_v54 }
  0x35   :  { %332 = vmatpush.msrb.mxu3 %v308_v41  ;;  %372 = vmatpush.msrb.mxu1 %v340_v55 }
  0x37   :  { %333 = vmatpush.msrb.mxu3 %v307_v42 }
  0x39   :  { %334 = vmatpush.msrb.mxu3 %v306_v43 }
  0x8e   :  { %v65_v35 = vpop.f32.mrf.mxu0 }
  0x8f   :  { %v66_v36 = vadd.f32 %v408_v34, %v65_v35  ;;  %v275_v34 = vld [vmem:[#allocation2 + $0x240] sm:$0xff]  ;;  %v274_v35 = vld [vmem:[#allocation2 + $0x238] sm:$0xff] }
  0x91   :  { %417 = vtanh.f32 %v66_v36  ;;  %v413_v36 = vld [vmem:[%s540_s3 + $0x5] ss:$0 sm:$0xff] }
  0x97   :  { %v418_v37 = vpop.eup %417 }
  0x98   :  { %106 = vmatmul.f32.vlgmr.msra.gmra.mxu1 %v418_v37 }
 0x115   :  { %v107_v2 = vpop.f32.mrf.mxu1 }
 0x116   :  { %v108_v3 = vadd.f32 %v409_v1, %v107_v2 }
 0x118   :  { %419 = vtanh.f32 %v108_v3 }
 0x11e   :  { %v420_v4 = vpop.eup %419 }
 0x11f   :  { %148 = vmatmul.f32.vlgmr.msra.gmra.mxu2 %v420_v4 }
 0x120   :  { %299 = vmatpush.msra.mxu2 %v275_v34 }
 0x122   :  { %300 = vmatpush.msra.mxu2 %v274_v35 }
 0x1a2   :  { %v149_v16 = vpop.f32.mrf.mxu2 }
 0x1a3   :  { %v150_v17 = vadd.f32 %v410_v15, %v149_v16 }
 0x1a5   :  { %421 = vtanh.f32 %v150_v17 }
 0x1ab   :  { %v422_v18 = vpop.eup %421 }
 0x1ac   :  { %190 = vmatmul.f32.vlgmr.msra.gmra.mxu3 %v422_v18  ;;  %232 = vmatmul.f32.vlgmr.msrb.gmra.mxu0 %v422_v18 }
 0x229   :  { %v233_v21 = vpop.f32.mrf.mxu0 }
 0x22a   :  { %v234_v22 = vadd.f32 %v411_v20, %v233_v21 }
 0x22c   :  { %423 = vtanh.f32 %v234_v22 }
 0x22f   :  { %v191_v24 = vpop.f32.mrf.mxu3 }
 0x230   :  { %v192_v25 = vadd.f32 %v412_v23, %v191_v24 }
 0x232   :  { %v424_v26 = vpop.eup %423  ;;  %425 = vtanh.f32 %v192_v25 }
 0x233   :  { %v238_v27 = vmul.f32 0.5, %v424_v26  ;;  %404 = vst [vmem:[%s541_s4 + $0x18] sm:$0xff] %v424_v26 }
 0x235   :  { %v239_v28 = vmul.f32 1.442695, %v238_v27 }
 0x237   :  { %427 = vpow2.f32 %v239_v28 }
 0x238   :  { %v426_v29 = vpop.eup %425 }
 0x239   :  { %403 = vst [vmem:[%s541_s4 + $0x10] sm:$0xff] %v426_v29 }
 0x23d   :  { %v428_v31 = vpop.eup %427 }
 0x23e   :  { %v241_v32 = vmul.f32 %v428_v31, %v237_v30 }
 0x240   :  { %v242_v33 = vadd.f32 %v426_v29, %v241_v32 }
 0x242   :  { %395 = vmatmul.msk.f32.vlgmr.msrb.gmra.mxu2 %vm249_vm1, %v242_v33  ;;  %402 = vst [vmem:[%s541_s4 + $0x8] sm:$0xff] %v242_v33 }
 0x2c5   :  { %v270_v37 = vpop.f32.mrf.mxu2 }
 0x2c6   :  { %v271_v38 = vadd.f32 %v413_v36, %v270_v37 }
 0x2c8   :  { %429 = vtanh.f32 %v271_v38 }
 0x2ce   :  { %v430_v39 = vpop.eup %429 }
 0x2cf   :  { %397 = vmatmul.msk.f32.vlgmr.msra.gmra.mxu2 %vm281_vm2, %v430_v39 }
 0x352   :  { %v302_v48 = vpop.f32.mrf.mxu2 }
 0x353   :  { %v303_v49 = vadd.f32 %v414_v47, %v302_v48 }
 0x355   :  { %431 = vtanh.f32 %v303_v49 }
 0x35b   :  { %v432_v50 = vpop.eup %431 }
 0x35c   :  { %399 = vmatmul.msk.f32.vlgmr.msrb.gmra.mxu3 %vm315_vm3, %v432_v50 }
 0x3df   :  { %v336_v57 = vpop.f32.mrf.mxu3 }
 0x3e0   :  { %v337_v58 = vadd.f32 %v415_v56, %v336_v57 }
 0x3e2   :  { %433 = vtanh.f32 %v337_v58 }
 0x3e8   :  { %v434_v59 = vpop.eup %433 }
 0x3e9   :  { %401 = vmatmul.msk.f32.vlgmr.msrb.gmra.mxu1 %vm353_vm4, %v434_v59 }
 0x466   :  { %v374_v61 = vpop.f32.mrf.mxu1 }
 0x467   :  { %v375_v62 = vadd.f32 %v416_v60, %v374_v61 }
 0x469   :  { %377 = vst [vmem:[%s541_s4] sm:$0xff] %v375_v62 }
 0x46a   :  { %388 = vsyncpa [#allocation3], 1 }

</bundles_post_ra>
